<compile_context>
chip_gen: v6e
topology: v6e:2x2x1
jax: 0.10.0
libtpu: 0.0.40
codegen_flags: <defaults>
</compile_context>

<pallas_src>
import functools

import numpy as np
import jax
import jax.numpy as jnp
from jax.experimental import pallas as pl
from jax.experimental.pallas import tpu as pltpu


# ------------------------------ Pallas kernel -------------------------------

def _iter_ds_kernel(x_ref, m1_ref, m2_ref, x1_ref, x2_ref, *, split_f32):
    """One row-tile: y1 = X @ M1 (2x2 pool), y2 = X @ M2 (4x4 pool)."""
    x = x_ref[...]                      # (tm, G)  input dtype
    m1 = m1_ref[...]                    # (G, P1)  bf16, entries {0, 0.25}
    m2 = m2_ref[...]                    # (G, P2)  bf16, entries {0, 1/16}

    if split_f32:
        # Exact-ish f32 path: hi/lo bf16 split of the activations; pooling weights
        # are powers of two and therefore exact in bf16.  Max abs error ~2e-5.
        x_hi = x.astype(jnp.bfloat16)
        x_lo = (x.astype(jnp.float32) - x_hi.astype(jnp.float32)).astype(jnp.bfloat16)
        y1 = (jnp.dot(x_hi, m1, preferred_element_type=jnp.float32)
              + jnp.dot(x_lo, m1, preferred_element_type=jnp.float32))
        y2 = (jnp.dot(x_hi, m2, preferred_element_type=jnp.float32)
              + jnp.dot(x_lo, m2, preferred_element_type=jnp.float32))
    else:
        # bf16 activations: single matmul per output, f32 accumulation.
        y1 = jnp.dot(x, m1, preferred_element_type=jnp.float32)
        y2 = jnp.dot(x, m2, preferred_element_type=jnp.float32)

    x1_ref[...] = y1.astype(x1_ref.dtype)
    x2_ref[...] = y2.astype(x2_ref.dtype)


# --------------------------- host-side constants -----------------------------

def _pick_group_rows(total_rows, w):
    """Smallest R (multiple of 4, dividing total_rows) whose group width R*W keeps
    the weight matrices small (<= 2048 lanes) while making the x1 store lane-dense
    (R*W/4 >= 128) when achievable."""
    best = 4
    r = 4
    while r <= total_rows and r * w <= 2048:
        if total_rows % r == 0:
            best = r
            if (r * w) // 4 >= 128:
                break
        r += 4
    return best


def _group_pool_matrices(r_rows, w):
    """numpy (compile-time) pooling matrices for one group of r_rows image rows.

    M1: (r_rows*W, (r_rows//2)*W1)  entries 0.25  -> 2x2 avg pool (x1 rows of group)
    M2: (r_rows*W, (r_rows//4)*W2)  entries 1/16  -> 4x4 avg pool (x2 rows of group)
    Odd trailing columns (W not a multiple of 2/4) get zero weight (floor mode).
    """
    w1, w2 = w // 2, w // 4
    g = r_rows * w
    p1 = (r_rows // 2) * w1
    p2 = (r_rows // 4) * w2

    r = np.arange(g) // w               # row index within the group
    c = np.arange(g) % w                # column index within the row

    s1 = np.arange(p1) // w1            # x1 row within group
    v1 = np.arange(p1) % w1             # x1 column
    m1 = ((r[:, None] // 2 == s1[None, :]) &
          (c[:, None] // 2 == v1[None, :])).astype(np.float32) * 0.25

    s2 = np.arange(p2) // w2            # x2 row within group
    v2 = np.arange(p2) % w2             # x2 column
    m2 = ((r[:, None] // 4 == s2[None, :]) &
          (c[:, None] // 4 == v2[None, :])).astype(np.float32) * (1.0 / 16.0)
    return m1, m2


# ------------------------------- JAX wrapper --------------------------------

def iter_downsample_forward(x_nchw):
    N, C, H, W = x_nchw.shape
    assert H % 4 == 0 and W >= 4, "Iter_Downsample Pallas kernel expects H % 4 == 0, W >= 4"
    H1, W1 = H // 2, W // 2
    H2, W2 = H1 // 2, W1 // 2

    in_dtype = x_nchw.dtype
    itemsize = x_nchw.dtype.itemsize
    split_f32 = in_dtype != jnp.bfloat16

    total_rows = N * C * H
    R = _pick_group_rows(total_rows, W)          # rows of x per group (multiple of 4)
    G = R * W                                    # flattened group width (lanes)
    P1 = (R // 2) * W1                           # x1 lanes per group row
    P2 = (R // 4) * W2                           # x2 lanes per group row
    MROWS = total_rows // R                      # matmul M dimension (N*C*H folded)

    # Host/numpy compile-time constants; 0.25 and 1/16 are exact in bf16.
    m1_np, m2_np = _group_pool_matrices(R, W)
    m1 = jnp.asarray(m1_np, dtype=jnp.bfloat16)
    m2 = jnp.asarray(m2_np, dtype=jnp.bfloat16)

    # Free row-major metadata reshape: (N, C, H, W) -> (MROWS, G).  No dtype cast.
    xg = x_nchw.reshape(MROWS, G)

    # Row-tile size: ~2 MiB of activations per block, multiple of 8 sublanes,
    # or the whole problem in one block when it is small (toy test => grid=(1,)).
    tm_cand = (2 * 1024 * 1024 // (G * itemsize)) // 8 * 8
    tm = min(MROWS, max(8, tm_cand))
    grid = (pl.cdiv(MROWS, tm),)

    n_mm = 2 if split_f32 else 1
    flops = 2 * MROWS * G * (P1 + P2) * n_mm
    bytes_accessed = (MROWS * G * itemsize            # x read
                      + (m1.size + m2.size) * 2       # bf16 constants
                      + MROWS * (P1 + P2) * itemsize) # x1/x2 writes

    y1g, y2g = pl.pallas_call(
        functools.partial(_iter_ds_kernel, split_f32=split_f32),
        out_shape=(jax.ShapeDtypeStruct((MROWS, P1), in_dtype),
                   jax.ShapeDtypeStruct((MROWS, P2), in_dtype)),
        grid_spec=pltpu.PrefetchScalarGridSpec(
            num_scalar_prefetch=0,
            grid=grid,
            in_specs=[
                pl.BlockSpec((tm, G), lambda i: (i, 0)),
                # Constant index_map -> Pallas skips re-DMA of the weights after
                # the first grid step (pl.Buffered(1) would also halve their
                # footprint, but it is unnecessary at these sizes).
                pl.BlockSpec((G, P1), lambda i: (0, 0)),
                pl.BlockSpec((G, P2), lambda i: (0, 0)),
            ],
            out_specs=[
                pl.BlockSpec((tm, P1), lambda i: (i, 0)),
                pl.BlockSpec((tm, P2), lambda i: (i, 0)),
            ],
        ),
        compiler_params=pltpu.CompilerParams(
            dimension_semantics=("parallel",),
            vmem_limit_bytes=32 * 1024 * 1024,
        ),
        cost_estimate=pl.CostEstimate(flops=flops, transcendentals=0,
                                      bytes_accessed=bytes_accessed),
    )(xg, m1, m2)

    # Free row-major reshapes back to NCHW.
    x1 = y1g.reshape(N, C, H1, W1)
    x2 = y2g.reshape(N, C, H2, W2)
    return x_nchw, x1, x2                        # first output is the input itself


# ---------------------------- pure-JAX reference ----------------------------

def _avgpool2_ref(x_nchw):
    n, c, h, w = x_nchw.shape
    x = x_nchw[:, :, :2 * (h // 2), :2 * (w // 2)]
    return x.reshape(n, c, h // 2, 2, w // 2, 2).mean(axis=(3, 5))


# ------------------------------------ main -----------------------------------

if __name__ == "__main__":
    key = jax.random.PRNGKey(0)
    N, C, H, W = 2, 4, 16, 16
    x = jax.random.normal(key, (N, C, H, W), jnp.float32)

    fwd = jax.jit(iter_downsample_forward)

    # float32 path (hi/lo bf16 split, ~2e-5 max abs error vs exact f32 AvgPool).
    x0, x1, x2 = fwd(x)
    jax.block_until_ready((x0, x1, x2))

    assert x0.shape == (N, C, H, W) and x0.dtype == x.dtype
    assert x1.shape == (N, C, H // 2, W // 2) and x1.dtype == x.dtype
    assert x2.shape == (N, C, H // 4, W // 4) and x2.dtype == x.dtype

    x1_ref = _avgpool2_ref(x)
    x2_ref = _avgpool2_ref(x1_ref)
    err0 = float(jnp.max(jnp.abs(x0 - x)))
    err1 = float(jnp.max(jnp.abs(x1 - x1_ref)))
    err2 = float(jnp.max(jnp.abs(x2 - x2_ref)))
    assert err0 == 0.0, err0
    assert err1 < 1e-4, f"x1 max abs error {err1}"
    assert err2 < 1e-4, f"x2 max abs error {err2}"

    # bfloat16 path (single matmul per output, dtype preserved on all outputs).
    xb = x.astype(jnp.bfloat16)
    xb0, xb1, xb2 = fwd(xb)
    jax.block_until_ready((xb0, xb1, xb2))
    assert xb0.dtype == jnp.bfloat16 and xb1.dtype == jnp.bfloat16 and xb2.dtype == jnp.bfloat16
    xb1_ref = _avgpool2_ref(xb.astype(jnp.float32))
    xb2_ref = _avgpool2_ref(xb1_ref)
    errb1 = float(jnp.max(jnp.abs(xb1.astype(jnp.float32) - xb1_ref)))
    errb2 = float(jnp.max(jnp.abs(xb2.astype(jnp.float32) - xb2_ref)))
    assert errb1 < 3e-2, f"bf16 x1 max abs error {errb1}"
    assert errb2 < 3e-2, f"bf16 x2 max abs error {errb2}"

    print("KERNEL_OK")
</pallas_src>

<mosaic_0001>
module attributes {stable_mosaic.version = 11 : i64} {
  func.func @_iter_ds_kernel(%arg0: i32, %arg1: memref<4x512xf32, #tpu.memory_space<vmem>>, %arg2: memref<512x128xbf16, #tpu.memory_space<vmem>>, %arg3: memref<512x32xbf16, #tpu.memory_space<vmem>>, %arg4: memref<4x128xf32, #tpu.memory_space<vmem>>, %arg5: memref<4x32xf32, #tpu.memory_space<vmem>>) attributes {dimension_semantics = [#tpu.dimension_semantics<parallel>], iteration_bounds = array<i64: 1>, scalar_prefetch = 0 : i64, scratch_operands = 0 : i64, tpu.core_type = #tpu.core_type<tc>, window_params = [{transform_indices = @transform_0, window_bounds = array<i64: 4, 512>}, {pipeline_mode = #tpu.pipeline_mode<synchronous>, transform_indices = @transform_1, window_bounds = array<i64: 512, 128>}, {pipeline_mode = #tpu.pipeline_mode<synchronous>, transform_indices = @transform_2, window_bounds = array<i64: 512, 32>}, {transform_indices = @transform_3, window_bounds = array<i64: 4, 128>}, {transform_indices = @transform_4, window_bounds = array<i64: 4, 32>}]} {
    %c0 = arith.constant 0 : index
    %c0_0 = arith.constant 0 : index
    %0 = vector.load %arg1[%c0, %c0_0] : memref<4x512xf32, #tpu.memory_space<vmem>>, vector<4x512xf32>
    %c0_1 = arith.constant 0 : index
    %c0_2 = arith.constant 0 : index
    %1 = vector.load %arg2[%c0_1, %c0_2] : memref<512x128xbf16, #tpu.memory_space<vmem>>, vector<512x128xbf16>
    %c0_3 = arith.constant 0 : index
    %c0_4 = arith.constant 0 : index
    %2 = vector.load %arg3[%c0_3, %c0_4] : memref<512x32xbf16, #tpu.memory_space<vmem>>, vector<512x32xbf16>
    %3 = arith.truncf %0 : vector<4x512xf32> to vector<4x512xbf16>
    %4 = arith.extf %3 : vector<4x512xbf16> to vector<4x512xf32>
    %5 = arith.subf %0, %4 : vector<4x512xf32>
    %6 = arith.truncf %5 : vector<4x512xf32> to vector<4x512xbf16>
    %cst = arith.constant dense<0.000000e+00> : vector<4x128xf32>
    %7 = tpu.matmul %3, %1, %cst {dimension_numbers = #tpu.dot_dimension_numbers<[1], [0], [0], [1], [0, 0, 1, 1], [], []>} : vector<4x512xbf16>, vector<512x128xbf16>, vector<4x128xf32> -> vector<4x128xf32>
    %cst_5 = arith.constant dense<0.000000e+00> : vector<4x128xf32>
    %8 = tpu.matmul %6, %1, %cst_5 {dimension_numbers = #tpu.dot_dimension_numbers<[1], [0], [0], [1], [0, 0, 1, 1], [], []>} : vector<4x512xbf16>, vector<512x128xbf16>, vector<4x128xf32> -> vector<4x128xf32>
    %9 = arith.addf %7, %8 : vector<4x128xf32>
    %cst_6 = arith.constant dense<0.000000e+00> : vector<4x32xf32>
    %10 = tpu.matmul %3, %2, %cst_6 {dimension_numbers = #tpu.dot_dimension_numbers<[1], [0], [0], [1], [0, 0, 1, 1], [], []>} : vector<4x512xbf16>, vector<512x32xbf16>, vector<4x32xf32> -> vector<4x32xf32>
    %cst_7 = arith.constant dense<0.000000e+00> : vector<4x32xf32>
    %11 = tpu.matmul %6, %2, %cst_7 {dimension_numbers = #tpu.dot_dimension_numbers<[1], [0], [0], [1], [0, 0, 1, 1], [], []>} : vector<4x512xbf16>, vector<512x32xbf16>, vector<4x32xf32> -> vector<4x32xf32>
    %12 = arith.addf %10, %11 : vector<4x32xf32>
    %c0_8 = arith.constant 0 : index
    %c0_9 = arith.constant 0 : index
    %13 = vector.load %arg4[%c0_8, %c0_9] : memref<4x128xf32, #tpu.memory_space<vmem>>, vector<4x128xf32>
    tpu.vector_store %arg4[%c0_8, %c0_9], %9 {strides = array<i32>} : memref<4x128xf32, #tpu.memory_space<vmem>>, vector<4x128xf32>,
    %c0_10 = arith.constant 0 : index
    %c0_11 = arith.constant 0 : index
    %14 = vector.load %arg5[%c0_10, %c0_11] : memref<4x32xf32, #tpu.memory_space<vmem>>, vector<4x32xf32>
    tpu.vector_store %arg5[%c0_10, %c0_11], %12 {strides = array<i32>} : memref<4x32xf32, #tpu.memory_space<vmem>>, vector<4x32xf32>,
    return
  }
  func.func @transform_0(%arg0: i32) -> (i32, i32) {
    %c0_i32 = arith.constant 0 : i32
    %c0_i32_0 = arith.constant 0 : i32
    return %arg0, %c0_i32 : i32, i32
  }
  func.func @transform_1(%arg0: i32) -> (i32, i32) {
    %c0_i32 = arith.constant 0 : i32
    %c0_i32_0 = arith.constant 0 : i32
    %c0_i32_1 = arith.constant 0 : i32
    return %c0_i32, %c0_i32_0 : i32, i32
  }
  func.func @transform_2(%arg0: i32) -> (i32, i32) {
    %c0_i32 = arith.constant 0 : i32
    %c0_i32_0 = arith.constant 0 : i32
    %c0_i32_1 = arith.constant 0 : i32
    return %c0_i32, %c0_i32_0 : i32, i32
  }
  func.func @transform_3(%arg0: i32) -> (i32, i32) {
    %c0_i32 = arith.constant 0 : i32
    %c0_i32_0 = arith.constant 0 : i32
    return %arg0, %c0_i32 : i32, i32
  }
  func.func @transform_4(%arg0: i32) -> (i32, i32) {
    %c0_i32 = arith.constant 0 : i32
    %c0_i32_0 = arith.constant 0 : i32
    return %arg0, %c0_i32 : i32, i32
  }
}

</mosaic_0001>

<bundles_post_ra>
// kernel: iter_downsample_forward.1
= control target key start
LH: loop header
LB: loop body
LE: loop exit
PB: predicated region body
PF: predicated region fallthrough
CT: control target
= control target key end

     0   :  { %10 = vsyncpa [#allocation3], 0  ;;  %s1523_s0 = inlined_call_operand.vmem [shape: f32[4,512], index: 0, kind: input, shape index: {}]   ;;  %s1524_s1 = inlined_call_operand.hbm [shape: bf16[512,128], index: 1, kind: input, shape index: {}]   ;;  %s1525_s2 = inlined_call_operand.hbm [shape: bf16[512,32], index: 2, kind: input, shape index: {}]   ;;  %s1526_s3 = inlined_call_operand.vmem [shape: f32[4,128], index: 3, kind: output, shape index: {0}]   ;;  %s1527_s4 = inlined_call_operand.vmem [shape: f32[4,32], index: 4, kind: output, shape index: {1}]  }
   0x1   :  { %11 = vsyncpa [#allocation5], 0  ;;  %s1280_s15 = smov [#allocation2]  }
   0x2   :  { %s19_s16 = sshll.u32 %s1280_s15, 4  ;;  %s20_s16 = int_to_ptr.vmem [resolvable:$true] %s19_s16 }
   0x3   :  { %s1244_s17 = scalar_lea.vmem %s20_s16, 4096  ;;  %p1249_p1 = scmp.lt.s32.totalorder %s20_s16, %s20_s16 }
   0x4   :  { %p1245_p0 = scmp.ne.s32.totalorder %s20_s16, %s1244_s17  ;;  %p1250_p2 = scmp.lt.s32.totalorder %s1244_s17, %s1244_s17 }
   0x6   :  { %p1251_p3 = por %p1250_p2, %p1249_p1 }
   0x8   :  { %p1252_p4 = pnand %p1251_p3, %p1245_p0 }
   0xa   :  { %1255 = shalt.err (!%p1252_p4)
}
   0xb   :  { %s1281_s18 = smov 64   ;;  %s1282_s19 = smov 4  }
   0xc   :  { %25 = dma.hbm_to_vmem [thread:$0]  %s1524_s1, 4096, %s20_s16, [#allocation3], %s1281_s18, %s1281_s18, %s1282_s19  }
   0xd   :  { %s1283_s22 = smov [#allocation4]  }
   0xe   :  { %s31_s23 = sshll.u32 %s1283_s22, 4  ;;  %s32_s23 = int_to_ptr.vmem [resolvable:$true] %s31_s23 }
   0xf   :  { %s1264_s24 = scalar_lea.vmem %s32_s23, 4096  ;;  %p1269_p6 = scmp.lt.s32.totalorder %s32_s23, %s32_s23 }
  0x10   :  { %p1265_p5 = scmp.ne.s32.totalorder %s32_s23, %s1264_s24  ;;  %p1270_p7 = scmp.lt.s32.totalorder %s1264_s24, %s1264_s24 }
  0x12   :  { %p1271_p8 = por %p1270_p7, %p1269_p6 }
  0x14   :  { %p1272_p9 = pnand %p1271_p8, %p1265_p5 }
  0x16   :  { %1275 = shalt.err (!%p1272_p9)
}
  0x17   :  { %37 = dma.hbm_to_vmem [thread:$0]  %s1525_s2, 4096, %s32_s23, [#allocation5], %s1281_s18, %s1281_s18, %s1282_s19  }
  0x18   :  { %1276 = dma.done.wait [#allocation3], 4096  }
  0x19   :  { %1277 = vsyncadd [#allocation3], 4294963200 }
  0x1a   :  { %1278 = dma.done.wait [#allocation5], 4096  }
  0x1b   :  { %1279 = vsyncadd [#allocation5], 4294963200  ;;  %v1315_v0 = vld [vmem:[#allocation2 + $0x78] sm:$0xff]   ;;  %v1326_v4 = vld [vmem:[#allocation2 + $0x70] sm:$0xff]   ;;  %vm914_vm0 = vcmask 257024  }
  0x1c   :  { %v1317_v1 = vld [vmem:[#allocation2 + $0xf8] sm:$0xff]   ;;  %990 = vmatprep.subr.bf16.mxu0 %v1315_v0  ;;  %v1329_v5 = vld [vmem:[#allocation2 + $0xf0] sm:$0xff]   ;;  %v1338_v8 = vld [vmem:[#allocation2 + $0x68] sm:$0xff]  }
  0x1d   :  { %v1320_v2 = vld [vmem:[#allocation2 + $0x38] sm:$0xff]   ;;  %1012 = vmatprep.subr.bf16.mxu1 %v1317_v1  ;;  %v1332_v6 = vld [vmem:[#allocation2 + $0x30] sm:$0xff]   ;;  %v1341_v9 = vld [vmem:[#allocation2 + $0xe8] sm:$0xff]  }
  0x1e   :  { %v1323_v3 = vld [vmem:[#allocation2 + $0xb8] sm:$0xff]   ;;  %991 = vmatpush3.bf16.msra.mxu0 %v1320_v2  ;;  %v1335_v7 = vld [vmem:[#allocation2 + $0xb0] sm:$0xff]   ;;  %v1344_v10 = vld [vmem:[#allocation2 + $0x28] sm:$0xff]  }
  0x1f   :  { %1013 = vmatpush3.bf16.msra.mxu1 %v1323_v3  ;;  %992 = vmatprep.subr.bf16.mxu0 %v1326_v4  ;;  %v1347_v11 = vld [vmem:[#allocation2 + $0xa8] sm:$0xff]   ;;  %v1350_v12 = vld [vmem:[#allocation2 + $0x60] sm:$0xff]   ;;  %v1362_v16 = vld [vmem:[#allocation2 + $0x58] sm:$0xff]  }
  0x20   :  { %1014 = vmatprep.subr.bf16.mxu1 %v1329_v5  ;;  %v1353_v13 = vld [vmem:[#allocation2 + $0xe0] sm:$0xff]   ;;  %v1365_v17 = vld [vmem:[#allocation2 + $0xd8] sm:$0xff]   ;;  %v1374_v20 = vld [vmem:[#allocation2 + $0x50] sm:$0xff]  }
  0x21   :  { %v1356_v14 = vld [vmem:[#allocation2 + $0x20] sm:$0xff]   ;;  %v1368_v18 = vld [vmem:[#allocation2 + $0x18] sm:$0xff]   ;;  %v1377_v21 = vld [vmem:[#allocation2 + $0xd0] sm:$0xff]  }
  0x22   :  { %993 = vmatpush3.bf16.msra.mxu0 %v1332_v6  ;;  %v1359_v15 = vld [vmem:[#allocation2 + $0xa0] sm:$0xff]   ;;  %v1371_v19 = vld [vmem:[#allocation2 + $0x98] sm:$0xff]   ;;  %v1380_v22 = vld [vmem:[#allocation2 + $0x10] sm:$0xff]  }
  0x23   :  { %1015 = vmatpush3.bf16.msra.mxu1 %v1335_v7  ;;  %994 = vmatprep.subr.bf16.mxu0 %v1338_v8  ;;  %v1383_v23 = vld [vmem:[#allocation2 + $0x90] sm:$0xff]   ;;  %v1386_v24 = vld [vmem:[#allocation2 + $0x48] sm:$0xff]   ;;  %v1398_v28 = vld [vmem:[#allocation2 + $0x40] sm:$0xff]  }
  0x24   :  { %1016 = vmatprep.subr.bf16.mxu1 %v1341_v9  ;;  %v1389_v25 = vld [vmem:[#allocation2 + $0xc8] sm:$0xff]   ;;  %v1401_v29 = vld [vmem:[#allocation2 + $0xc0] sm:$0xff]   ;;  %v1467_v54 = vld [vmem:[#allocation4 + $0x78] sm:$0xff]  }
  0x25   :  { %v1392_v26 = vld [vmem:[#allocation2 + $0x8] sm:$0xff]   ;;  %v1404_v30 = vld [vmem:[#allocation2] sm:$0xff]   ;;  %v1469_v55 = vld [vmem:[#allocation4 + $0xf8] sm:$0xff]  }
  0x26   :  { %995 = vmatpush3.bf16.msra.mxu0 %v1344_v10  ;;  %v1395_v27 = vld [vmem:[#allocation2 + $0x88] sm:$0xff]   ;;  %v1407_v31 = vld [vmem:[#allocation2 + $0x80] sm:$0xff]   ;;  %v1473_v56 = vld [vmem:[#allocation4 + $0x38] sm:$0xff]  }
  0x27   :  { %1017 = vmatpush3.bf16.msra.mxu1 %v1347_v11  ;;  %996 = vmatprep.subr.bf16.mxu0 %v1350_v12  ;;  %v45_v32 = vld [vmem:[%s1523_s0] sm:$0xff]  ;;  %v46_v33 = vld [vmem:[%s1523_s0 + $0x8] sm:$0xff]  ;;  %v1475_v57 = vld [vmem:[#allocation4 + $0xb8] sm:$0xff]  }
  0x28   :  { %1018 = vmatprep.subr.bf16.mxu1 %v1353_v13  ;;  %v177_v34 = vcombine.high %v45_v32, %v45_v32  ;;  %v1417_v35 = vpack.c.bf16 %v45_v32, %v45_v32  ;;  %v178_v36 = vcombine.high %v46_v33, %v46_v33  ;;  %v1419_v37 = vpack.c.bf16 %v46_v33, %v46_v33  ;;  %v1479_v58 = vld [vmem:[#allocation4 + $0x70] sm:$0xff]   ;;  %v1493_v62 = vld [vmem:[#allocation4 + $0x68] sm:$0xff]  }
  0x29   :  { %v1481_v59 = vld [vmem:[#allocation4 + $0xf0] sm:$0xff]   ;;  %v1495_v63 = vld [vmem:[#allocation4 + $0xe8] sm:$0xff]  }
  0x2a   :  { %997 = vmatpush3.bf16.msra.mxu0 %v1356_v14  ;;  %v1423_v38 = vpack.c.bf16 %v177_v34, %v177_v34  ;;  %v185_v39 = vunpack.c.l.bf16 %v1417_v35  ;;  %v1426_v40 = vpack.c.bf16 %v178_v36, %v178_v36  ;;  %v187_v41 = vunpack.c.l.bf16 %v1419_v37  ;;  %v1487_v60 = vld [vmem:[#allocation4 + $0x30] sm:$0xff]  }
  0x2b   :  { %1019 = vmatpush3.bf16.msra.mxu1 %v1359_v15  ;;  %998 = vmatprep.subr.bf16.mxu0 %v1362_v16  ;;  %v1489_v61 = vld [vmem:[#allocation4 + $0xb0] sm:$0xff]  }
  0x2c   :  { %1020 = vmatprep.subr.bf16.mxu1 %v1365_v17  ;;  %v186_v42 = vunpack.c.l.bf16 %v1423_v38  ;;  %v188_v43 = vunpack.c.l.bf16 %v1426_v40 }
  0x2e   :  { %999 = vmatpush3.bf16.msra.mxu0 %v1368_v18  ;;  %v193_v44 = vcombine.low %v185_v39, %v186_v42  ;;  %v194_v45 = vcombine.low %v187_v41, %v188_v43 }
  0x2f   :  { %1021 = vmatpush3.bf16.msra.mxu1 %v1371_v19  ;;  %1000 = vmatprep.subr.bf16.mxu0 %v1374_v20 }
  0x30   :  { %1022 = vmatprep.subr.bf16.mxu1 %v1377_v21  ;;  %v197_v46 = vsub.f32 %v45_v32, %v193_v44  ;;  %v198_v47 = vsub.f32 %v46_v33, %v194_v45 }
  0x32   :  { %1001 = vmatpush3.bf16.msra.mxu0 %v1380_v22  ;;  %v201_v48 = vcombine.high %v197_v46, %v197_v46  ;;  %v202_v49 = vcombine.high %v198_v47, %v198_v47  ;;  %v1431_v50 = vpack.c.bf16 %v197_v46, %v197_v46  ;;  %v1433_v51 = vpack.c.bf16 %v198_v47, %v198_v47 }
  0x33   :  { %1023 = vmatpush3.bf16.msra.mxu1 %v1383_v23  ;;  %1002 = vmatprep.subr.bf16.mxu0 %v1386_v24 }
  0x34   :  { %1024 = vmatprep.subr.bf16.mxu1 %v1389_v25  ;;  %v206_v52 = vpack.c.bf16 %v201_v48, %v201_v48  ;;  %v208_v53 = vpack.c.bf16 %v202_v49, %v202_v49 }
  0x36   :  { %1003 = vmatpush3.bf16.msra.mxu0 %v1392_v26  ;;  %433 = vmatprep.mubr.bf16.mxu0 %v206_v52 }
  0x37   :  { %1025 = vmatpush3.bf16.msra.mxu1 %v1395_v27  ;;  %1004 = vmatprep.subr.bf16.mxu0 %v1398_v28 }
  0x38   :  { %1026 = vmatprep.subr.bf16.mxu1 %v1401_v29  ;;  %473 = vmatprep.mubr.bf16.mxu1 %v208_v53 }
  0x3a   :  { %1005 = vmatpush3.bf16.msra.mxu0 %v1404_v30 }
  0x3b   :  { %1027 = vmatpush3.bf16.msra.mxu1 %v1407_v31  ;;  %1034 = vmatprep.subr.bf16.mxu0 %v1315_v0  ;;  %v1214_v0 = vld [vmem:[#allocation4 + $0x28] sm:$0xff]  }
  0x3c   :  { %1056 = vmatprep.subr.bf16.mxu1 %v1317_v1  ;;  %v1215_v1 = vld [vmem:[#allocation4 + $0xa8] sm:$0xff]  }
  0x3d   :  { %434 = vmatmul.mubr.bf16.vlgmr.msra.gmra.mxu0 %v1431_v50 }
  0x3e   :  { %474 = vmatmul.mubr.bf16.vlgmr.msra.gmra.mxu1 %v1433_v51  ;;  %1035 = vmatpush3.bf16.msra.mxu0 %v1320_v2  ;;  %v1216_v2 = vld [vmem:[#allocation4 + $0x60] sm:$0xff]  }
  0x3f   :  { %1057 = vmatpush3.bf16.msra.mxu1 %v1323_v3  ;;  %1036 = vmatprep.subr.bf16.mxu0 %v1326_v4  ;;  %v1217_v3 = vld [vmem:[#allocation4 + $0xe0] sm:$0xff]  }
  0x40   :  { %1058 = vmatprep.subr.bf16.mxu1 %v1329_v5  ;;  %513 = vmatprep.mubr.bf16.mxu0 %v1423_v38  ;;  %v1218_v4 = vld [vmem:[#allocation4 + $0x20] sm:$0xff]  }
  0x41   :  { %553 = vmatprep.mubr.bf16.mxu1 %v1426_v40  ;;  %v1219_v5 = vld [vmem:[#allocation4 + $0xa0] sm:$0xff]  }
  0x42   :  { %1037 = vmatpush3.bf16.msra.mxu0 %v1332_v6  ;;  %v1220_v6 = vld [vmem:[#allocation4 + $0x58] sm:$0xff]  }
  0x43   :  { %1059 = vmatpush3.bf16.msra.mxu1 %v1335_v7  ;;  %1038 = vmatprep.subr.bf16.mxu0 %v1338_v8  ;;  %v1221_v7 = vld [vmem:[#allocation4 + $0xd8] sm:$0xff]  }
  0x44   :  { %1060 = vmatprep.subr.bf16.mxu1 %v1341_v9  ;;  %v1222_v8 = vld [vmem:[#allocation4 + $0x18] sm:$0xff]  }
  0x45   :  { %v1223_v9 = vld [vmem:[#allocation4 + $0x98] sm:$0xff]  }
  0x46   :  { %1039 = vmatpush3.bf16.msra.mxu0 %v1344_v10  ;;  %v1224_v10 = vld [vmem:[#allocation4 + $0x50] sm:$0xff]  }
  0x47   :  { %1061 = vmatpush3.bf16.msra.mxu1 %v1347_v11  ;;  %1040 = vmatprep.subr.bf16.mxu0 %v1350_v12  ;;  %v1225_v11 = vld [vmem:[#allocation4 + $0xd0] sm:$0xff]  }
  0x48   :  { %1062 = vmatprep.subr.bf16.mxu1 %v1353_v13  ;;  %v1226_v12 = vld [vmem:[#allocation4 + $0x10] sm:$0xff]  }
  0x49   :  { %v1227_v13 = vld [vmem:[#allocation4 + $0x90] sm:$0xff]  }
  0x4a   :  { %1041 = vmatpush3.bf16.msra.mxu0 %v1356_v14  ;;  %v1228_v14 = vld [vmem:[#allocation4 + $0x48] sm:$0xff]  }
  0x4b   :  { %1063 = vmatpush3.bf16.msra.mxu1 %v1359_v15  ;;  %1042 = vmatprep.subr.bf16.mxu0 %v1362_v16  ;;  %v1229_v15 = vld [vmem:[#allocation4 + $0xc8] sm:$0xff]  }
  0x4c   :  { %1064 = vmatprep.subr.bf16.mxu1 %v1365_v17  ;;  %v1230_v16 = vld [vmem:[#allocation4 + $0x8] sm:$0xff]  }
  0x4d   :  { %v1231_v17 = vld [vmem:[#allocation4 + $0x88] sm:$0xff]  }
  0x4e   :  { %1043 = vmatpush3.bf16.msra.mxu0 %v1368_v18  ;;  %v1232_v18 = vld [vmem:[#allocation4 + $0x40] sm:$0xff]  }
  0x4f   :  { %1065 = vmatpush3.bf16.msra.mxu1 %v1371_v19  ;;  %1044 = vmatprep.subr.bf16.mxu0 %v1374_v20  ;;  %v1233_v19 = vld [vmem:[#allocation4 + $0xc0] sm:$0xff]  }
  0x50   :  { %1066 = vmatprep.subr.bf16.mxu1 %v1377_v21  ;;  %v1234_v20 = vld [vmem:[#allocation4] sm:$0xff]  }
  0x51   :  { %v1235_v21 = vld [vmem:[#allocation4 + $0x80] sm:$0xff]  }
  0x52   :  { %1045 = vmatpush3.bf16.msra.mxu0 %v1380_v22 }
  0x53   :  { %1067 = vmatpush3.bf16.msra.mxu1 %v1383_v23  ;;  %1046 = vmatprep.subr.bf16.mxu0 %v1386_v24 }
  0x54   :  { %1068 = vmatprep.subr.bf16.mxu1 %v1389_v25 }
  0x56   :  { %1047 = vmatpush3.bf16.msra.mxu0 %v1392_v26 }
  0x57   :  { %1069 = vmatpush3.bf16.msra.mxu1 %v1395_v27  ;;  %1048 = vmatprep.subr.bf16.mxu0 %v1398_v28 }
  0x58   :  { %1070 = vmatprep.subr.bf16.mxu1 %v1401_v29 }
  0x5a   :  { %1049 = vmatpush3.bf16.msra.mxu0 %v1404_v30 }
  0x5b   :  { %1071 = vmatpush3.bf16.msra.mxu1 %v1407_v31  ;;  %1078 = vmatprep.subr.bf16.mxu0 %v1467_v54 }
  0x5c   :  { %1100 = vmatprep.subr.bf16.mxu1 %v1469_v55 }
  0x5d   :  { %514 = vmatmul.mubr.bf16.vlgmr.msra.gmra.mxu0 %v1417_v35 }
  0x5e   :  { %554 = vmatmul.mubr.bf16.vlgmr.msra.gmra.mxu1 %v1419_v37  ;;  %1079 = vmatpush3.bf16.msra.mxu0 %v1473_v56 }
  0x5f   :  { %1101 = vmatpush3.bf16.msra.mxu1 %v1475_v57  ;;  %1080 = vmatprep.subr.bf16.mxu0 %v1479_v58 }
  0x60   :  { %1102 = vmatprep.subr.bf16.mxu1 %v1481_v59  ;;  %785 = vmatprep.mubr.bf16.mxu0 %v206_v52 }
  0x61   :  { %825 = vmatprep.mubr.bf16.mxu1 %v208_v53 }
  0x62   :  { %1081 = vmatpush3.bf16.msra.mxu0 %v1487_v60 }
  0x63   :  { %1103 = vmatpush3.bf16.msra.mxu1 %v1489_v61  ;;  %1082 = vmatprep.subr.bf16.mxu0 %v1493_v62 }
  0x64   :  { %1104 = vmatprep.subr.bf16.mxu1 %v1495_v63 }
  0x66   :  { %1083 = vmatpush3.bf16.msra.mxu0 %v1214_v0 }
  0x67   :  { %1105 = vmatpush3.bf16.msra.mxu1 %v1215_v1  ;;  %1084 = vmatprep.subr.bf16.mxu0 %v1216_v2 }
  0x68   :  { %1106 = vmatprep.subr.bf16.mxu1 %v1217_v3 }
  0x6a   :  { %1085 = vmatpush3.bf16.msra.mxu0 %v1218_v4 }
  0x6b   :  { %1107 = vmatpush3.bf16.msra.mxu1 %v1219_v5  ;;  %1086 = vmatprep.subr.bf16.mxu0 %v1220_v6 }
  0x6c   :  { %1108 = vmatprep.subr.bf16.mxu1 %v1221_v7 }
  0x6e   :  { %1087 = vmatpush3.bf16.msra.mxu0 %v1222_v8 }
  0x6f   :  { %1109 = vmatpush3.bf16.msra.mxu1 %v1223_v9  ;;  %1088 = vmatprep.subr.bf16.mxu0 %v1224_v10 }
  0x70   :  { %1110 = vmatprep.subr.bf16.mxu1 %v1225_v11 }
  0x72   :  { %1089 = vmatpush3.bf16.msra.mxu0 %v1226_v12 }
  0x73   :  { %1111 = vmatpush3.bf16.msra.mxu1 %v1227_v13  ;;  %1090 = vmatprep.subr.bf16.mxu0 %v1228_v14 }
  0x74   :  { %1112 = vmatprep.subr.bf16.mxu1 %v1229_v15 }
  0x76   :  { %1091 = vmatpush3.bf16.msra.mxu0 %v1230_v16 }
  0x77   :  { %1113 = vmatpush3.bf16.msra.mxu1 %v1231_v17  ;;  %1092 = vmatprep.subr.bf16.mxu0 %v1232_v18 }
  0x78   :  { %1114 = vmatprep.subr.bf16.mxu1 %v1233_v19 }
  0x7a   :  { %1093 = vmatpush3.bf16.msra.mxu0 %v1234_v20 }
  0x7b   :  { %1115 = vmatpush3.bf16.msra.mxu1 %v1235_v21  ;;  %1122 = vmatprep.subr.bf16.mxu0 %v1467_v54 }
  0x7c   :  { %1144 = vmatprep.subr.bf16.mxu1 %v1469_v55 }
  0x7d   :  { %786 = vmatmul.mubr.bf16.vlgmr.msra.gmra.mxu0 %v1431_v50 }
  0x7e   :  { %826 = vmatmul.mubr.bf16.vlgmr.msra.gmra.mxu1 %v1433_v51  ;;  %1123 = vmatpush3.bf16.msra.mxu0 %v1473_v56 }
  0x7f   :  { %1145 = vmatpush3.bf16.msra.mxu1 %v1475_v57  ;;  %1124 = vmatprep.subr.bf16.mxu0 %v1479_v58 }
  0x80   :  { %1146 = vmatprep.subr.bf16.mxu1 %v1481_v59  ;;  %865 = vmatprep.mubr.bf16.mxu0 %v1423_v38 }
  0x81   :  { %905 = vmatprep.mubr.bf16.mxu1 %v1426_v40 }
  0x82   :  { %1125 = vmatpush3.bf16.msra.mxu0 %v1487_v60 }
  0x83   :  { %1147 = vmatpush3.bf16.msra.mxu1 %v1489_v61  ;;  %1126 = vmatprep.subr.bf16.mxu0 %v1493_v62 }
  0x84   :  { %1148 = vmatprep.subr.bf16.mxu1 %v1495_v63 }
  0x86   :  { %1127 = vmatpush3.bf16.msra.mxu0 %v1214_v0 }
  0x87   :  { %1149 = vmatpush3.bf16.msra.mxu1 %v1215_v1  ;;  %1128 = vmatprep.subr.bf16.mxu0 %v1216_v2 }
  0x88   :  { %1150 = vmatprep.subr.bf16.mxu1 %v1217_v3 }
  0x8a   :  { %1129 = vmatpush3.bf16.msra.mxu0 %v1218_v4 }
  0x8b   :  { %1151 = vmatpush3.bf16.msra.mxu1 %v1219_v5  ;;  %1130 = vmatprep.subr.bf16.mxu0 %v1220_v6 }
  0x8c   :  { %1152 = vmatprep.subr.bf16.mxu1 %v1221_v7 }
  0x8e   :  { %1131 = vmatpush3.bf16.msra.mxu0 %v1222_v8 }
  0x8f   :  { %1153 = vmatpush3.bf16.msra.mxu1 %v1223_v9  ;;  %1132 = vmatprep.subr.bf16.mxu0 %v1224_v10 }
  0x90   :  { %1154 = vmatprep.subr.bf16.mxu1 %v1225_v11 }
  0x92   :  { %1133 = vmatpush3.bf16.msra.mxu0 %v1226_v12 }
  0x93   :  { %1155 = vmatpush3.bf16.msra.mxu1 %v1227_v13  ;;  %1134 = vmatprep.subr.bf16.mxu0 %v1228_v14 }
  0x94   :  { %1156 = vmatprep.subr.bf16.mxu1 %v1229_v15 }
  0x96   :  { %1135 = vmatpush3.bf16.msra.mxu0 %v1230_v16 }
  0x97   :  { %1157 = vmatpush3.bf16.msra.mxu1 %v1231_v17  ;;  %1136 = vmatprep.subr.bf16.mxu0 %v1232_v18 }
  0x98   :  { %1158 = vmatprep.subr.bf16.mxu1 %v1233_v19 }
  0x9a   :  { %1137 = vmatpush3.bf16.msra.mxu0 %v1234_v20 }
  0x9b   :  { %1159 = vmatpush3.bf16.msra.mxu1 %v1235_v21 }
  0x9d   :  { %866 = vmatmul.mubr.bf16.vlgmr.msra.gmra.mxu0 %v1417_v35 }
  0x9e   :  { %906 = vmatmul.mubr.bf16.vlgmr.msra.gmra.mxu1 %v1419_v37 }
  0xfd   :  { %v1006_v22 = vpop.f32.mrf.mxu0 }
  0xfe   :  { %v1028_v23 = vpop.f32.mrf.mxu1 }
  0xff   :  { %v1007_v24 = vpop.f32.mrf.mxu0 }
 0x100   :  { %v1029_v25 = vpop.f32.mrf.mxu1  ;;  %v1008_v30 = vadd.f32 %v1007_v24, %v1006_v22 }
 0x101   :  { %v1009_v26 = vpop.f32.mrf.mxu0  ;;  %v1030_v31 = vadd.f32 %v1029_v25, %v1028_v23 }
 0x102   :  { %v1031_v27 = vpop.f32.mrf.mxu1 }
 0x103   :  { %v1010_v28 = vpop.f32.mrf.mxu0  ;;  %v476_v38 = vadd.f32 %v1030_v31, %v1008_v30 }
 0x104   :  { %v1032_v29 = vpop.f32.mrf.mxu1 }
 0x11d   :  { %v1050_v32 = vpop.f32.mrf.mxu0 }
 0x11e   :  { %v1072_v33 = vpop.f32.mrf.mxu1 }
 0x11f   :  { %v1051_v34 = vpop.f32.mrf.mxu0 }
 0x120   :  { %v1073_v36 = vpop.f32.mrf.mxu1  ;;  %v1052_v39 = vadd.f32 %v1051_v34, %v1050_v32 }
 0x121   :  { %v1074_v40 = vadd.f32 %v1073_v36, %v1072_v33  ;;  %v1053_v35 = vpop.f32.mrf.mxu0 }
 0x122   :  { %v1075_v41 = vpop.f32.mrf.mxu1  ;;  %v516_v37 = vadd.f32 %v1052_v39, %v476_v38 }
 0x123   :  { %v1054_v42 = vpop.f32.mrf.mxu0 }
 0x124   :  { %v1076_v43 = vpop.f32.mrf.mxu1  ;;  %v556_v44 = vadd.f32 %v1074_v40, %v516_v37 }
 0x126   :  { %913 = vst [vmem:[%s1526_s3] sm:$0xf] %v556_v44 }
 0x13d   :  { %v1094_v45 = vpop.f32.mrf.mxu0 }
 0x13e   :  { %v1116_v46 = vpop.f32.mrf.mxu1 }
 0x13f   :  { %v1095_v47 = vpop.f32.mrf.mxu0 }
 0x140   :  { %v1117_v48 = vpop.f32.mrf.mxu1  ;;  %v1096_v53 = vadd.f32 %v1095_v47, %v1094_v45 }
 0x141   :  { %v1097_v49 = vpop.f32.mrf.mxu0  ;;  %v1118_v54 = vadd.f32 %v1117_v48, %v1116_v46 }
 0x142   :  { %v1119_v50 = vpop.f32.mrf.mxu1 }
 0x143   :  { %v1098_v51 = vpop.f32.mrf.mxu0  ;;  %v828_v59 = vadd.f32 %v1118_v54, %v1096_v53 }
 0x144   :  { %v1120_v52 = vpop.f32.mrf.mxu1 }
 0x15d   :  { %v1138_v55 = vpop.f32.mrf.mxu0 }
 0x15e   :  { %v1160_v56 = vpop.f32.mrf.mxu1 }
 0x15f   :  { %v1139_v57 = vpop.f32.mrf.mxu0 }
 0x160   :  { %v1161_v58 = vpop.f32.mrf.mxu1  ;;  %v1140_v60 = vadd.f32 %v1139_v57, %v1138_v55 }
 0x161   :  { %v1141_v61 = vpop.f32.mrf.mxu0  ;;  %v1162_v0 = vadd.f32 %v1161_v58, %v1160_v56 }
 0x162   :  { %v1163_v62 = vpop.f32.mrf.mxu1  ;;  %v868_v63 = vadd.f32 %v1140_v60, %v828_v59 }
 0x163   :  { %v1142_v1 = vpop.f32.mrf.mxu0 }
 0x164   :  { %v1164_v2 = vpop.f32.mrf.mxu1  ;;  %v908_v3 = vadd.f32 %v1162_v0, %v868_v63 }
 0x166   :  { %915 = vst.msk [vmem:[%s1527_s4] sm:$0xf] %vm914_vm0, %v908_v3 }
 0x167   :  { %924 = vsyncpa [#allocation3], 1 }
 0x168   :  { %925 = vsyncpa [#allocation5], 1 }

</bundles_post_ra>
